<compile_context>
chip_gen: v7x
topology: tpu7x:2x2x1
jax: 0.10.0
libtpu: 0.0.40
codegen_flags: <defaults>
</compile_context>

<pallas_src>
import jax
import jax.numpy as jnp
from jax.experimental import pallas as pl
from jax.experimental.pallas import tpu as pltpu

FEAT = 50  # Linear(50, 50)


def _round_up(x, m):
    return ((x + m - 1) // m) * m


def _fusion_kernel(e1_ref, e2_ref, w1_ref, b1_ref, w2_ref, b2_ref, o_ref):
    """One batch block: ReLU(e1 @ W1^T + b1) + ReLU(e2 @ W2^T + b2).

    e1_ref, e2_ref : (TB, 50)  streamed input tiles
    w1_ref, w2_ref : (50, 50)  transposed weights (VMEM-resident, constant index_map)
    b1_ref, b2_ref : (1, 50)   biases (VMEM-resident)
    o_ref          : (TB, 50)  fused output at final width
    """
    y1 = jnp.dot(e1_ref[...], w1_ref[...], preferred_element_type=jnp.float32)
    y2 = jnp.dot(e2_ref[...], w2_ref[...], preferred_element_type=jnp.float32)
    y = jnp.maximum(y1 + b1_ref[...], 0.0) + jnp.maximum(y2 + b2_ref[...], 0.0)
    o_ref[...] = y.astype(o_ref.dtype)


def embedding_fusion_ref(emb_1, emb_2, w1, b1, w2, b2):
    """Pure-JAX reference matching the PyTorch forward exactly."""
    y1 = jnp.maximum(emb_1 @ w1.T + b1, 0.0)
    y2 = jnp.maximum(emb_2 @ w2.T + b2, 0.0)
    return y1 + y2


def embedding_fusion(emb_1, emb_2, w1, b1, w2, b2, *,
                     block_rows=4096, core_parallel=False):
    """Pallas-backed EmbeddingFusion forward.

    emb_1, emb_2 : (B, 50) float32
    w1, w2       : (50, 50) float32  (PyTorch Linear weight layout: [out, in])
    b1, b2       : (50,)    float32
    returns      : (B, 50) float32
    """
    B, F = emb_1.shape
    assert F == FEAT and emb_2.shape == (B, F)
    out_dtype = emb_1.dtype
    f32 = jnp.float32

    # Batch tile: multiple of 8 sublanes; large by default to amortize per-step
    # pipeline overhead (the op is HBM-bound).  No wrapper-side batch padding:
    # pl.cdiv + Pallas's masked ragged last block handle B % tb != 0.
    tb = min(_round_up(block_rows, 8), _round_up(B, 8))
    grid = (pl.cdiv(B, tb),)

    # Tiny one-time parameter plumbing (negligible next to the streamed inputs).
    w1t = w1.T.astype(f32)
    w2t = w2.T.astype(f32)
    b1r = b1.astype(f32).reshape(1, FEAT)
    b2r = b2.astype(f32).reshape(1, FEAT)

    dim_sem = (pltpu.CORE_PARALLEL,) if core_parallel else ("parallel",)

    bytes_per_row = 3 * FEAT * 4                      # read e1 + e2, write out
    cost = pl.CostEstimate(
        flops=int(2 * B * FEAT * FEAT * 2),
        transcendentals=0,
        bytes_accessed=int(B * bytes_per_row + 2 * FEAT * FEAT * 4 + 2 * FEAT * 4),
    )

    out = pl.pallas_call(
        _fusion_kernel,
        out_shape=jax.ShapeDtypeStruct((B, FEAT), out_dtype),
        grid=grid,
        in_specs=[
            pl.BlockSpec((tb, FEAT), lambda i: (i, 0)),    # emb_1 (streamed)
            pl.BlockSpec((tb, FEAT), lambda i: (i, 0)),    # emb_2 (streamed)
            pl.BlockSpec((FEAT, FEAT), lambda i: (0, 0)),  # W1^T  (resident)
            pl.BlockSpec((1, FEAT), lambda i: (0, 0)),     # b1    (resident)
            pl.BlockSpec((FEAT, FEAT), lambda i: (0, 0)),  # W2^T  (resident)
            pl.BlockSpec((1, FEAT), lambda i: (0, 0)),     # b2    (resident)
        ],
        out_specs=pl.BlockSpec((tb, FEAT), lambda i: (i, 0)),
        compiler_params=pltpu.CompilerParams(
            dimension_semantics=dim_sem,
            # Explicit limit keeps tb=4096 tiles safe on v5e's 16 MiB default
            # scoped budget; well under physical VMEM on all generations.
            vmem_limit_bytes=32 * 1024 * 1024,
        ),
        cost_estimate=cost,
    )(emb_1.astype(f32), emb_2.astype(f32), w1t, b1r, w2t, b2r)

    return out


if __name__ == "__main__":
    key = jax.random.PRNGKey(0)
    k_e1, k_e2, k_w1, k_b1, k_w2, k_b2, k_e3, k_e4 = jax.random.split(key, 8)

    # Deterministic parameters (roughly PyTorch's uniform(-1/sqrt(in), 1/sqrt(in))).
    bound = 1.0 / jnp.sqrt(jnp.float32(FEAT))
    w1 = jax.random.uniform(k_w1, (FEAT, FEAT), jnp.float32, -bound, bound)
    b1 = jax.random.uniform(k_b1, (FEAT,), jnp.float32, -bound, bound)
    w2 = jax.random.uniform(k_w2, (FEAT, FEAT), jnp.float32, -bound, bound)
    b2 = jax.random.uniform(k_b2, (FEAT,), jnp.float32, -bound, bound)

    # Check 1: small batch, single full block.
    B1 = 8
    e1 = jax.random.normal(k_e1, (B1, FEAT), dtype=jnp.float32)
    e2 = jax.random.normal(k_e2, (B1, FEAT), dtype=jnp.float32)
    out1 = jax.block_until_ready(embedding_fusion(e1, e2, w1, b1, w2, b2))
    ref1 = embedding_fusion_ref(e1, e2, w1, b1, w2, b2)
    assert out1.shape == (B1, FEAT)
    assert jnp.allclose(out1, ref1, atol=1e-5, rtol=1e-5)

    # Check 2: multi-block grid with a ragged last block (B=300, 128-row tiles -> 3 blocks).
    B2 = 300
    e3 = jax.random.normal(k_e3, (B2, FEAT), dtype=jnp.float32)
    e4 = jax.random.normal(k_e4, (B2, FEAT), dtype=jnp.float32)
    out2 = jax.block_until_ready(
        embedding_fusion(e3, e4, w1, b1, w2, b2, block_rows=128))
    ref2 = embedding_fusion_ref(e3, e4, w1, b1, w2, b2)
    assert out2.shape == (B2, FEAT)
    assert jnp.allclose(out2, ref2, atol=1e-5, rtol=1e-5)

    # Check 3: default (large) tile path -> single ragged block covering all of B.
    out3 = jax.block_until_ready(embedding_fusion(e3, e4, w1, b1, w2, b2))
    assert out3.shape == (B2, FEAT)
    assert jnp.allclose(out3, ref2, atol=1e-5, rtol=1e-5)

    print("KERNEL_OK")
</pallas_src>

<mosaic_0001>
module attributes {stable_mosaic.version = 11 : i64} {
  func.func @_fusion_kernel(%arg0: i32, %arg1: memref<8x50xf32, #tpu.memory_space<vmem>>, %arg2: memref<8x50xf32, #tpu.memory_space<vmem>>, %arg3: memref<50x50xf32, #tpu.memory_space<vmem>>, %arg4: memref<1x50xf32, #tpu.memory_space<vmem>>, %arg5: memref<50x50xf32, #tpu.memory_space<vmem>>, %arg6: memref<1x50xf32, #tpu.memory_space<vmem>>, %arg7: memref<8x50xf32, #tpu.memory_space<vmem>>) attributes {dimension_semantics = [#tpu.dimension_semantics<parallel>], iteration_bounds = array<i64: 1>, scalar_prefetch = 0 : i64, scratch_operands = 0 : i64, tpu.core_type = #tpu.core_type<tc>, window_params = [{transform_indices = @transform_0, window_bounds = array<i64: 8, 50>}, {transform_indices = @transform_1, window_bounds = array<i64: 8, 50>}, {pipeline_mode = #tpu.pipeline_mode<synchronous>, transform_indices = @transform_2, window_bounds = array<i64: 50, 50>}, {pipeline_mode = #tpu.pipeline_mode<synchronous>, transform_indices = @transform_3, window_bounds = array<i64: 1, 50>}, {pipeline_mode = #tpu.pipeline_mode<synchronous>, transform_indices = @transform_4, window_bounds = array<i64: 50, 50>}, {pipeline_mode = #tpu.pipeline_mode<synchronous>, transform_indices = @transform_5, window_bounds = array<i64: 1, 50>}, {transform_indices = @transform_6, window_bounds = array<i64: 8, 50>}]} {
    %c0 = arith.constant 0 : index
    %c0_0 = arith.constant 0 : index
    %0 = vector.load %arg1[%c0, %c0_0] : memref<8x50xf32, #tpu.memory_space<vmem>>, vector<8x50xf32>
    %c0_1 = arith.constant 0 : index
    %c0_2 = arith.constant 0 : index
    %1 = vector.load %arg3[%c0_1, %c0_2] : memref<50x50xf32, #tpu.memory_space<vmem>>, vector<50x50xf32>
    %cst = arith.constant dense<0.000000e+00> : vector<8x50xf32>
    %2 = tpu.matmul %0, %1, %cst {dimension_numbers = #tpu.dot_dimension_numbers<[1], [0], [0], [1], [0, 0, 1, 1], [], []>} : vector<8x50xf32>, vector<50x50xf32>, vector<8x50xf32> -> vector<8x50xf32>
    %c0_3 = arith.constant 0 : index
    %c0_4 = arith.constant 0 : index
    %3 = vector.load %arg2[%c0_3, %c0_4] : memref<8x50xf32, #tpu.memory_space<vmem>>, vector<8x50xf32>
    %c0_5 = arith.constant 0 : index
    %c0_6 = arith.constant 0 : index
    %4 = vector.load %arg5[%c0_5, %c0_6] : memref<50x50xf32, #tpu.memory_space<vmem>>, vector<50x50xf32>
    %cst_7 = arith.constant dense<0.000000e+00> : vector<8x50xf32>
    %5 = tpu.matmul %3, %4, %cst_7 {dimension_numbers = #tpu.dot_dimension_numbers<[1], [0], [0], [1], [0, 0, 1, 1], [], []>} : vector<8x50xf32>, vector<50x50xf32>, vector<8x50xf32> -> vector<8x50xf32>
    %c0_8 = arith.constant 0 : index
    %c0_9 = arith.constant 0 : index
    %6 = vector.load %arg4[%c0_8, %c0_9] : memref<1x50xf32, #tpu.memory_space<vmem>>, vector<1x50xf32>
    %7 = vector.broadcast %6 : vector<1x50xf32> to vector<8x50xf32>
    %8 = arith.addf %2, %7 : vector<8x50xf32>
    %cst_10 = arith.constant 0.000000e+00 : f32
    %9 = vector.broadcast %cst_10 : f32 to vector<8x50xf32>
    %10 = arith.maximumf %8, %9 : vector<8x50xf32>
    %c0_11 = arith.constant 0 : index
    %c0_12 = arith.constant 0 : index
    %11 = vector.load %arg6[%c0_11, %c0_12] : memref<1x50xf32, #tpu.memory_space<vmem>>, vector<1x50xf32>
    %12 = vector.broadcast %11 : vector<1x50xf32> to vector<8x50xf32>
    %13 = arith.addf %5, %12 : vector<8x50xf32>
    %cst_13 = arith.constant 0.000000e+00 : f32
    %14 = vector.broadcast %cst_13 : f32 to vector<8x50xf32>
    %15 = arith.maximumf %13, %14 : vector<8x50xf32>
    %16 = arith.addf %10, %15 : vector<8x50xf32>
    %c0_14 = arith.constant 0 : index
    %c0_15 = arith.constant 0 : index
    %17 = vector.load %arg7[%c0_14, %c0_15] : memref<8x50xf32, #tpu.memory_space<vmem>>, vector<8x50xf32>
    tpu.vector_store %arg7[%c0_14, %c0_15], %16 {strides = array<i32>} : memref<8x50xf32, #tpu.memory_space<vmem>>, vector<8x50xf32>,
    return
  }
  func.func @transform_0(%arg0: i32) -> (i32, i32) {
    %c0_i32 = arith.constant 0 : i32
    %c0_i32_0 = arith.constant 0 : i32
    return %arg0, %c0_i32 : i32, i32
  }
  func.func @transform_1(%arg0: i32) -> (i32, i32) {
    %c0_i32 = arith.constant 0 : i32
    %c0_i32_0 = arith.constant 0 : i32
    return %arg0, %c0_i32 : i32, i32
  }
  func.func @transform_2(%arg0: i32) -> (i32, i32) {
    %c0_i32 = arith.constant 0 : i32
    %c0_i32_0 = arith.constant 0 : i32
    %c0_i32_1 = arith.constant 0 : i32
    return %c0_i32, %c0_i32_0 : i32, i32
  }
  func.func @transform_3(%arg0: i32) -> (i32, i32) {
    %c0_i32 = arith.constant 0 : i32
    %c0_i32_0 = arith.constant 0 : i32
    %c0_i32_1 = arith.constant 0 : i32
    return %c0_i32, %c0_i32_0 : i32, i32
  }
  func.func @transform_4(%arg0: i32) -> (i32, i32) {
    %c0_i32 = arith.constant 0 : i32
    %c0_i32_0 = arith.constant 0 : i32
    %c0_i32_1 = arith.constant 0 : i32
    return %c0_i32, %c0_i32_0 : i32, i32
  }
  func.func @transform_5(%arg0: i32) -> (i32, i32) {
    %c0_i32 = arith.constant 0 : i32
    %c0_i32_0 = arith.constant 0 : i32
    %c0_i32_1 = arith.constant 0 : i32
    return %c0_i32, %c0_i32_0 : i32, i32
  }
  func.func @transform_6(%arg0: i32) -> (i32, i32) {
    %c0_i32 = arith.constant 0 : i32
    %c0_i32_0 = arith.constant 0 : i32
    return %arg0, %c0_i32 : i32, i32
  }
}

</mosaic_0001>

<bundles_post_ra>
// kernel: tpu_custom_call.1
= control target key start
LH: loop header
LB: loop body
LE: loop exit
PB: predicated region body
PF: predicated region fallthrough
CT: control target
= control target key end

     0   :  { %11 = vsyncpa [#allocation3], 0  ;;  %s596_s0 = inlined_call_operand.hbm [shape: f32[8,50], index: 0, kind: input, shape index: {}]   ;;  %s597_s1 = inlined_call_operand.hbm [shape: f32[8,50], index: 1, kind: input, shape index: {}]   ;;  %s598_s2 = inlined_call_operand.hbm [shape: f32[50,50], index: 2, kind: input, shape index: {}]   ;;  %s599_s3 = inlined_call_operand.vmem [shape: f32[1,50], index: 3, kind: input, shape index: {}]   ;;  %s600_s4 = inlined_call_operand.hbm [shape: f32[50,50], index: 4, kind: input, shape index: {}]   ;;  %s601_s5 = inlined_call_operand.vmem [shape: f32[1,50], index: 5, kind: input, shape index: {}]   ;;  %s602_s6 = inlined_call_operand.hbm [shape: f32[8,50], index: 6, kind: output, shape index: {}]  }
   0x1   :  { %12 = vsyncpa [#allocation6], 0 }
   0x2   :  { %13 = vsyncpa [#allocation9], 0 }
   0x3   :  { %14 = vsyncpa [#allocation4], 0  ;;  %s482_s21 = smov [#allocation5]   ;;  %s483_s23 = smov [#allocation2]  }
   0x4   :  { %s31_s22 = sshll.u32 %s482_s21, 4  ;;  %s21_s24 = sshll.u32 %s483_s23, 4  ;;  %s32_s22 = int_to_ptr.vmem [resolvable:$true] %s31_s22  ;;  %s22_s24 = int_to_ptr.vmem [resolvable:$true] %s21_s24 }
   0x5   :  { %s364_s27 = scalar_lea.hbm %s597_s1, 128 }
   0x6   :  { %p365_p0 = scmp.ne.s32.totalorder %s597_s1, %s364_s27  ;;  %p368_p1 = scmp.lt.u32.totalorder %s364_s27, %s597_s1 }
   0x8   :  { %p370_p2 = pnand %p368_p1, %p365_p0 }
   0xa   :  { %373 = shalt.err (!%p370_p2)
}
   0xb   :  { %s374_s8 = scalar_lea.vmem %s32_s22, 128  ;;  %p379_p4 = scmp.lt.s32.totalorder %s32_s22, %s32_s22 }
   0xc   :  { %p375_p3 = scmp.ne.s32.totalorder %s32_s22, %s374_s8  ;;  %p380_p5 = scmp.lt.s32.totalorder %s374_s8, %s374_s8 }
   0xe   :  { %p381_p6 = por %p380_p5, %p379_p4 }
  0x10   :  { %p382_p7 = pnand %p381_p6, %p375_p3 }
  0x12   :  { %385 = shalt.err (!%p382_p7)
}
  0x13   :  { %34 = dma.hbm_to_vmem [thread:$0]  %s597_s1, 128, %s32_s22, [#allocation6]  }
  0x14   :  { %s386_s13 = scalar_lea.hbm %s596_s0, 128 }
  0x15   :  { %p387_p8 = scmp.ne.s32.totalorder %s596_s0, %s386_s13  ;;  %p390_p9 = scmp.lt.u32.totalorder %s386_s13, %s596_s0 }
  0x17   :  { %p392_p10 = pnand %p390_p9, %p387_p8 }
  0x19   :  { %395 = shalt.err (!%p392_p10)
}
  0x1a   :  { %s396_s18 = scalar_lea.vmem %s22_s24, 128  ;;  %p401_p12 = scmp.lt.s32.totalorder %s22_s24, %s22_s24 }
  0x1b   :  { %p397_p11 = scmp.ne.s32.totalorder %s22_s24, %s396_s18  ;;  %p402_p13 = scmp.lt.s32.totalorder %s396_s18, %s396_s18 }
  0x1d   :  { %p403_p0 = por %p402_p13, %p401_p12 }
  0x1f   :  { %p404_p1 = pnand %p403_p0, %p397_p11 }
  0x21   :  { %407 = shalt.err (!%p404_p1)
}
  0x22   :  { %24 = dma.hbm_to_vmem [thread:$0]  %s596_s0, 128, %s22_s24, [#allocation3]  }
  0x23   :  { %s484_s20 = smov [#allocation7]   ;;  %s408_s25 = scalar_lea.hbm %s598_s2, 896 }
  0x24   :  { %s40_s21 = sshll.u32 %s484_s20, 4  ;;  %p409_p2 = scmp.ne.s32.totalorder %s598_s2, %s408_s25  ;;  %s41_s21 = int_to_ptr.vmem [resolvable:$true] %s40_s21 }
  0x25   :  { %p412_p3 = scmp.lt.u32.totalorder %s408_s25, %s598_s2 }
  0x27   :  { %p414_p4 = pnand %p412_p3, %p409_p2 }
  0x29   :  { %417 = shalt.err (!%p414_p4)
}
  0x2a   :  { %s418_s30 = scalar_lea.vmem %s41_s21, 896  ;;  %p423_p6 = scmp.lt.s32.totalorder %s41_s21, %s41_s21 }
  0x2b   :  { %p419_p5 = scmp.ne.s32.totalorder %s41_s21, %s418_s30  ;;  %p424_p7 = scmp.lt.s32.totalorder %s418_s30, %s418_s30 }
  0x2d   :  { %p425_p8 = por %p424_p7, %p423_p6 }
  0x2f   :  { %p426_p9 = pnand %p425_p8, %p419_p5 }
  0x31   :  { %429 = shalt.err (!%p426_p9)
}
  0x32   :  { %s485_s0 = smov 128   ;;  %s486_s24 = smov 8  }
  0x33   :  { %46 = dma.hbm_to_vmem [thread:$0]  %s598_s2, 896, %s41_s21, [#allocation6], %s485_s0, %s485_s0, %s486_s24  }
  0x34   :  { %s487_s9 = smov [#allocation8]   ;;  %s430_s13 = scalar_lea.hbm %s600_s4, 896 }
  0x35   :  { %s54_s10 = sshll.u32 %s487_s9, 4  ;;  %p431_p10 = scmp.ne.s32.totalorder %s600_s4, %s430_s13  ;;  %s55_s10 = int_to_ptr.vmem [resolvable:$true] %s54_s10 }
  0x36   :  { %p434_p11 = scmp.lt.u32.totalorder %s430_s13, %s600_s4 }
  0x38   :  { %p436_p12 = pnand %p434_p11, %p431_p10 }
  0x3a   :  { %439 = shalt.err (!%p436_p12)
}
  0x3b   :  { %s440_s18 = scalar_lea.vmem %s55_s10, 896  ;;  %p445_p0 = scmp.lt.s32.totalorder %s55_s10, %s55_s10 }
  0x3c   :  { %p441_p13 = scmp.ne.s32.totalorder %s55_s10, %s440_s18  ;;  %p446_p1 = scmp.lt.s32.totalorder %s440_s18, %s440_s18 }
  0x3e   :  { %p447_p2 = por %p446_p1, %p445_p0 }
  0x40   :  { %p448_p3 = pnand %p447_p2, %p441_p13 }
  0x42   :  { %451 = shalt.err (!%p448_p3)
}
  0x43   :  { %60 = dma.hbm_to_vmem [thread:$0]  %s600_s4, 896, %s55_s10, [#allocation9], %s485_s0, %s485_s0, %s486_s24  }
  0x44   :  { %474 = dma.done.wait [#allocation3], 128  }
  0x45   :  { %475 = vsyncadd [#allocation3], 4294967168 }
  0x46   :  { %476 = dma.done.wait [#allocation6], 1024  }
  0x47   :  { %477 = vsyncadd [#allocation6], 4294966272 }
  0x48   :  { %478 = dma.done.wait [#allocation9], 896  }
  0x49   :  { %479 = vsyncadd [#allocation9], 4294966400  ;;  %v488_v0 = vmov 0.0|0.0   ;;  %vm489_vm0 = vmmov 0   ;;  %v490_v1 = vmov 0.0   ;;  %v76_v2 = vld [vmem:[#allocation7] sm:$0xff] }
  0x4a   :  { %336 = vmatprep.subr.bf16.mxu0 %v488_v0  ;;  %345 = vmatprep.subr.bf16.mxu1 %v488_v0  ;;  %v77_v3 = vld [vmem:[#allocation7 + $0x8] sm:$0xff]  ;;  %v84_v4 = vld [vmem:[#allocation8] sm:$0xff]  ;;  %v85_v6 = vld [vmem:[#allocation8 + $0x8] sm:$0xff]  ;;  %vm102_vm1 = vcmask 1041408   ;;  %vm98_vm2 = vcmask 408576   ;;  %s491_s22 = smov [#allocation10]  }
  0x4b   :  { %316 = vmatprep.mubr.msk.f32.mxu0 %vm489_vm0, %v490_v1  ;;  %333 = vmatprep.mubr.msk.f32.mxu1 %vm489_vm0, %v490_v1  ;;  %v337_v5 = vpack.c.bf16 %v77_v3, %v76_v2  ;;  %v78_v7 = vld [vmem:[#allocation7 + $0x10] sm:$0xff]  ;;  %v79_v8 = vld [vmem:[#allocation7 + $0x18] sm:$0xff]  ;;  %v346_v9 = vpack.c.bf16 %v85_v6, %v84_v4  ;;  %v86_v10 = vld [vmem:[#allocation8 + $0x10] sm:$0xff]  ;;  %s269_s23 = sshll.u32 %s491_s22, 4  ;;  %s270_s23 = int_to_ptr.vmem [resolvable:$true] %s269_s23 }
  0x4c   :  { %v87_v11 = vld [vmem:[#allocation8 + $0x18] sm:$0xff]  ;;  %v340_v12 = vpack.c.bf16 %v79_v8, %v78_v7  ;;  %v80_v14 = vld [vmem:[#allocation7 + $0x20] sm:$0xff]  ;;  %v81_v15 = vld [vmem:[#allocation7 + $0x28] sm:$0xff]  ;;  %s452_s25 = scalar_lea.vmem %s270_s23, 128  ;;  %p457_p5 = scmp.lt.s32.totalorder %s270_s23, %s270_s23 }
  0x4d   :  { %338 = vmatpush3.bf16.msra.mxu0 %v337_v5  ;;  %347 = vmatpush3.bf16.msra.mxu1 %v346_v9  ;;  %v349_v13 = vpack.c.bf16 %v87_v11, %v86_v10  ;;  %v88_v16 = vld [vmem:[#allocation8 + $0x20] sm:$0xff]  ;;  %v89_v17 = vld [vmem:[#allocation8 + $0x28] sm:$0xff]  ;;  %v343_v18 = vpack.c.bf16 %v81_v15, %v80_v14  ;;  %v82_v20 = vld [vmem:[#allocation7 + $0x30] sm:$0x3]  ;;  %p453_p4 = scmp.ne.s32.totalorder %s270_s23, %s452_s25  ;;  %p458_p6 = scmp.lt.s32.totalorder %s452_s25, %s452_s25 }
  0x4e   :  { %339 = vmatprep.subr.bf16.mxu0 %v488_v0  ;;  %348 = vmatprep.subr.bf16.mxu1 %v488_v0  ;;  %v352_v19 = vpack.c.bf16 %v89_v17, %v88_v16  ;;  %v90_v21 = vld [vmem:[#allocation8 + $0x30] sm:$0x3]  ;;  %v75_v22 = vld [vmem:[#allocation2] sm:$0xff]  ;;  %v83_v23 = vld [vmem:[#allocation5] sm:$0xff] }
  0x4f   :  { %v280_v24 = vld [vmem:[%s599_s3] ss:$0 sm:$0xff]  ;;  %p459_p7 = por %p458_p6, %p457_p5 }
  0x50   :  { %v283_v25 = vld [vmem:[%s601_s5] ss:$0 sm:$0xff] }
  0x51   :  { %341 = vmatpush3.bf16.msra.mxu0 %v340_v12  ;;  %350 = vmatpush3.bf16.msra.mxu1 %v349_v13  ;;  %p460_p8 = pnand %p459_p7, %p453_p4 }
  0x52   :  { %342 = vmatprep.subr.bf16.mxu0 %v488_v0  ;;  %351 = vmatprep.subr.bf16.mxu1 %v488_v0 }
  0x55   :  { %344 = vmatpush3.bf16.msra.mxu0 %v343_v18  ;;  %353 = vmatpush3.bf16.msra.mxu1 %v352_v19 }
  0x56   :  { %314 = vmatprep.subr.mxu0 %v490_v1  ;;  %331 = vmatprep.subr.mxu1 %v490_v1 }
  0x59   :  { %315 = vmatpush3.msk.msra.mxu0 %vm102_vm1, %v82_v20  ;;  %332 = vmatpush3.msk.msra.mxu1 %vm102_vm1, %v90_v21 }
  0x5a   :  { %317 = vmatmul.mubr.msk.f32.vlgmr.msra.gmra.mrb[0].mxu0 %vm98_vm2, %v75_v22  ;;  %334 = vmatmul.mubr.msk.f32.vlgmr.msra.gmra.mrb[0].mxu1 %vm98_vm2, %v83_v23 }
 0x12d   :  { %v172_v26 = vpop.f32.mrb[0].mxu0  ;;  %v256_v28 = vpop.f32.mrb[0].mxu1 }
 0x12e   :  { %v173_v27 = vadd.f32 %v280_v24, %v172_v26  ;;  %v318_v29 = vpop.f32.mrb[1].mxu0  ;;  %v257_v30 = vadd.f32 %v283_v25, %v256_v28  ;;  %v335_v31 = vpop.f32.mrb[1].mxu1 }
 0x130   :  { %v176_v32 = vmax.f32 %v173_v27, 0.0  ;;  %v260_v33 = vmax.f32 %v257_v30, 0.0 }
 0x132   :  { %v261_v34 = vadd.f32 %v260_v33, %v176_v32 }
 0x134   :  { %262 = vst.msk [vmem:[#allocation10] sm:$0xff] %vm98_vm2, %v261_v34 }
 0x135   :  { %463 = shalt.err (!%p460_p8)
}
 0x136   :  { %s464_s26 = scalar_lea.hbm %s602_s6, 128 }
 0x137   :  { %p465_p9 = scmp.ne.s32.totalorder %s602_s6, %s464_s26  ;;  %p468_p10 = scmp.lt.u32.totalorder %s464_s26, %s602_s6 }
 0x139   :  { %p470_p11 = pnand %p468_p10, %p465_p9 }
 0x13b   :  { %473 = shalt.err (!%p470_p11)
}
 0x13c   :  { %272 = dma.vmem_to_hbm [thread:$0]  %s270_s23, 128, %s602_s6, [#allocation4]  }
 0x13d   :  { %480 = dma.done.wait [#allocation4], 128  }
 0x13e   :  { %481 = vsyncadd [#allocation4], 4294967168 }
 0x13f   :  { %276 = vsyncpa [#allocation3], 1 }
 0x140   :  { %277 = vsyncpa [#allocation6], 1 }
 0x141   :  { %278 = vsyncpa [#allocation9], 1 }
 0x142   :  { %279 = vsyncpa [#allocation4], 1 }

</bundles_post_ra>
